<compile_context>
chip_gen: v7x
topology: tpu7x:2x2x1
jax: 0.10.0
libtpu: 0.0.40
codegen_flags: <defaults>
</compile_context>

<pallas_src>
import jax
import jax.numpy as jnp
from jax.experimental import pallas as pl
from jax.experimental.pallas import tpu as pltpu


def _round_up(x, m):
    return (x + m - 1) // m * m


def _cdiv(a, b):
    return (a + b - 1) // b


def _mf_kernel(ids_ref, uf_ref, if_ref, out_ref):
    """One lane-dense batch tile per grid step.

    ids_ref : (2, TILE_B) int32   -- row 0 = user ids, row 1 = item ids
    uf_ref  : (F_pad, NU_pad) f32 -- transposed zero-padded user table (VMEM-resident)
    if_ref  : (F_pad, NI_pad) f32 -- transposed zero-padded item table (VMEM-resident)
    out_ref : (1, TILE_B) f32     -- per-element dot products
    """
    nu = uf_ref.shape[1]
    ni = if_ref.shape[1]
    tb = out_ref.shape[1]

    ids = ids_ref[...]                                        # (2, TILE_B)
    u_ids = ids[0:1, :]                                       # (1, TILE_B)
    i_ids = ids[1:2, :]                                       # (1, TILE_B)

    # One-hot gather: onehot[n, b] = (n == id_b).  Built on the VPU (iota
    # compare broadcasts ids across sublanes for free), consumed by the MXU.
    u_oh = (jax.lax.broadcasted_iota(jnp.int32, (nu, tb), 0) == u_ids
            ).astype(jnp.float32)                             # (NU_pad, TILE_B)
    i_oh = (jax.lax.broadcasted_iota(jnp.int32, (ni, tb), 0) == i_ids
            ).astype(jnp.float32)                             # (NI_pad, TILE_B)

    u_rows = jnp.dot(uf_ref[...], u_oh,
                     preferred_element_type=jnp.float32)      # (F_pad, TILE_B)
    i_rows = jnp.dot(if_ref[...], i_oh,
                     preferred_element_type=jnp.float32)      # (F_pad, TILE_B)

    # One multiply + one sublane reduce + one full-lane unmasked store.
    out_ref[...] = jnp.sum(u_rows * i_rows, axis=0, keepdims=True)


def matrix_factorization_forward(data, user_factors, item_factors, tile_b=512):
    """data: (B, 2) int; user_factors: (n_users, F); item_factors: (n_items, F).
    Returns (B,) f32 == (user_factors[data[:,0]] * item_factors[data[:,1]]).sum(-1)."""
    B = data.shape[0]
    n_users, F = user_factors.shape
    n_items, Fi = item_factors.shape
    assert F == Fi

    # Lane-dense batch tile (multiple of 128).  Prefer >= 2 tiles when the
    # batch allows so the "parallel" axis can feed both v7x TensorCores.
    TILE_B = min(_round_up(tile_b, 128), max(128, _round_up(_cdiv(B, 2), 128)))
    num_tiles = _cdiv(B, TILE_B)
    B_pad = num_tiles * TILE_B

    F_pad = _round_up(F, 8)           # sublane-aligned feature axis
    NU_pad = _round_up(n_users, 128)  # lane-aligned id axes (clean MXU K)
    NI_pad = _round_up(n_items, 128)

    # VMEM residency budget (v7x has 64 MiB VMEM per core).
    # TODO(synk): for tables above ~40 MiB combined, switch to a manual
    # double-buffered row gather (tables in pl.ANY + pltpu.make_async_copy)
    # instead of VMEM residency.
    resident_bytes = 4 * F_pad * (NU_pad + NI_pad)
    pipeline_bytes = 2 * TILE_B * 4 * (2 + 1)   # double-buffered ids + out blocks
    vmem_limit = int(min(max(2 * resident_bytes + pipeline_bytes + (1 << 20),
                             16 << 20),
                         48 << 20))

    # Transposed, zero-padded tables (features on sublanes, ids on lanes).
    uf_t = jnp.zeros((F_pad, NU_pad), jnp.float32)
    uf_t = uf_t.at[:F, :n_users].set(user_factors.astype(jnp.float32).T)
    if_t = jnp.zeros((F_pad, NI_pad), jnp.float32)
    if_t = if_t.at[:F, :n_items].set(item_factors.astype(jnp.float32).T)

    # Single packed (2, B_pad) id array; padded slots get -1 (all-zero one-hot).
    ids = jnp.full((2, B_pad), -1, jnp.int32)
    ids = ids.at[:, :B].set(data.astype(jnp.int32).T)

    out = pl.pallas_call(
        _mf_kernel,
        out_shape=jax.ShapeDtypeStruct((1, B_pad), jnp.float32),
        grid=(num_tiles,),
        in_specs=[
            pl.BlockSpec((2, TILE_B), lambda t: (0, t)),
            pl.BlockSpec(memory_space=pltpu.MemorySpace.VMEM),  # whole user table, resident
            pl.BlockSpec(memory_space=pltpu.MemorySpace.VMEM),  # whole item table, resident
        ],
        out_specs=pl.BlockSpec((1, TILE_B), lambda t: (0, t)),
        compiler_params=pltpu.CompilerParams(
            dimension_semantics=("parallel",),
            vmem_limit_bytes=vmem_limit,
        ),
    )(ids, uf_t, if_t)

    return out[0, :B]


if __name__ == "__main__":
    n_users, n_items, n_factors = 16, 32, 20
    batch = 200  # > 128 so the kernel runs 2 "parallel" batch tiles

    key = jax.random.PRNGKey(0)
    k_uf, k_if, k_u, k_i = jax.random.split(key, 4)

    # Deterministic parameter init mirroring .uniform_(0, 0.05).
    user_factors = jax.random.uniform(k_uf, (n_users, n_factors),
                                      dtype=jnp.float32, minval=0.0, maxval=0.05)
    item_factors = jax.random.uniform(k_if, (n_items, n_factors),
                                      dtype=jnp.float32, minval=0.0, maxval=0.05)

    # data[:, 0] = user ids, data[:, 1] = item ids (torch LongTensor -> int32 here).
    users = jax.random.randint(k_u, (batch,), 0, n_users, dtype=jnp.int32)
    items = jax.random.randint(k_i, (batch,), 0, n_items, dtype=jnp.int32)
    data = jnp.stack([users, items], axis=1)          # (B, 2)

    out = matrix_factorization_forward(data, user_factors, item_factors)
    out = jax.block_until_ready(out)

    # Pure-JAX reference check.
    ref = jnp.sum(user_factors[data[:, 0]] * item_factors[data[:, 1]], axis=1)
    assert out.shape == (batch,)
    assert jnp.allclose(out, ref, atol=1e-5, rtol=1e-5)

    print("KERNEL_OK")
</pallas_src>

<mosaic_0001>
module attributes {stable_mosaic.version = 11 : i64} {
  func.func @_mf_kernel(%arg0: i32, %arg1: memref<2x128xi32, #tpu.memory_space<vmem>>, %arg2: memref<24x128xf32, #tpu.memory_space<vmem>>, %arg3: memref<24x128xf32, #tpu.memory_space<vmem>>, %arg4: memref<1x128xf32, #tpu.memory_space<vmem>>) attributes {dimension_semantics = [#tpu.dimension_semantics<parallel>], iteration_bounds = array<i64: 2>, scalar_prefetch = 0 : i64, scratch_operands = 0 : i64, tpu.core_type = #tpu.core_type<tc>, window_params = [{transform_indices = @transform_0, window_bounds = array<i64: 2, 128>}, {pipeline_mode = #tpu.pipeline_mode<synchronous>, transform_indices = @transform_1, window_bounds = array<i64: 24, 128>}, {pipeline_mode = #tpu.pipeline_mode<synchronous>, transform_indices = @transform_2, window_bounds = array<i64: 24, 128>}, {transform_indices = @transform_3, window_bounds = array<i64: 1, 128>}]} {
    %c0 = arith.constant 0 : index
    %c0_0 = arith.constant 0 : index
    %0 = vector.load %arg1[%c0, %c0_0] : memref<2x128xi32, #tpu.memory_space<vmem>>, vector<2x128xi32>
    %1 = vector.extract_strided_slice %0 {offsets = [0, 0], sizes = [1, 128], strides = [1, 1]} : vector<2x128xi32> to vector<1x128xi32>
    %2 = vector.extract_strided_slice %0 {offsets = [1, 0], sizes = [1, 128], strides = [1, 1]} : vector<2x128xi32> to vector<1x128xi32>
    %3 = tpu.iota {dimensions = array<i32: 0>} : vector<128x128xi32>
    %4 = vector.broadcast %1 : vector<1x128xi32> to vector<128x128xi32>
    %5 = arith.cmpi eq, %3, %4 : vector<128x128xi32>
    %6 = arith.extui %5 : vector<128x128xi1> to vector<128x128xi32>
    %7 = arith.sitofp %6 : vector<128x128xi32> to vector<128x128xf32>
    %8 = tpu.iota {dimensions = array<i32: 0>} : vector<128x128xi32>
    %9 = vector.broadcast %2 : vector<1x128xi32> to vector<128x128xi32>
    %10 = arith.cmpi eq, %8, %9 : vector<128x128xi32>
    %11 = arith.extui %10 : vector<128x128xi1> to vector<128x128xi32>
    %12 = arith.sitofp %11 : vector<128x128xi32> to vector<128x128xf32>
    %c0_1 = arith.constant 0 : index
    %c0_2 = arith.constant 0 : index
    %13 = vector.load %arg2[%c0_1, %c0_2] : memref<24x128xf32, #tpu.memory_space<vmem>>, vector<24x128xf32>
    %cst = arith.constant dense<0.000000e+00> : vector<24x128xf32>
    %14 = tpu.matmul %13, %7, %cst {dimension_numbers = #tpu.dot_dimension_numbers<[1], [0], [0], [1], [0, 0, 1, 1], [], []>} : vector<24x128xf32>, vector<128x128xf32>, vector<24x128xf32> -> vector<24x128xf32>
    %c0_3 = arith.constant 0 : index
    %c0_4 = arith.constant 0 : index
    %15 = vector.load %arg3[%c0_3, %c0_4] : memref<24x128xf32, #tpu.memory_space<vmem>>, vector<24x128xf32>
    %cst_5 = arith.constant dense<0.000000e+00> : vector<24x128xf32>
    %16 = tpu.matmul %15, %12, %cst_5 {dimension_numbers = #tpu.dot_dimension_numbers<[1], [0], [0], [1], [0, 0, 1, 1], [], []>} : vector<24x128xf32>, vector<128x128xf32>, vector<24x128xf32> -> vector<24x128xf32>
    %17 = arith.mulf %14, %16 : vector<24x128xf32>
    %cst_6 = arith.constant dense<0.000000e+00> : vector<128xf32>
    %18 = vector.multi_reduction <add>, %17, %cst_6 [0] : vector<24x128xf32> to vector<128xf32>
    %19 = vector.shape_cast %18 : vector<128xf32> to vector<1x128xf32>
    %c0_7 = arith.constant 0 : index
    %c0_8 = arith.constant 0 : index
    %20 = vector.load %arg4[%c0_7, %c0_8] : memref<1x128xf32, #tpu.memory_space<vmem>>, vector<1x128xf32>
    tpu.vector_store %arg4[%c0_7, %c0_8], %19 {strides = array<i32>} : memref<1x128xf32, #tpu.memory_space<vmem>>, vector<1x128xf32>,
    return
  }
  func.func @transform_0(%arg0: i32) -> (i32, i32) {
    %c0_i32 = arith.constant 0 : i32
    %c0_i32_0 = arith.constant 0 : i32
    return %c0_i32, %arg0 : i32, i32
  }
  func.func @transform_1(%arg0: i32) -> (i32, i32) {
    %c0_i32 = arith.constant 0 : i32
    %c0_i32_0 = arith.constant 0 : i32
    %c0_i32_1 = arith.constant 0 : i32
    return %c0_i32, %c0_i32_0 : i32, i32
  }
  func.func @transform_2(%arg0: i32) -> (i32, i32) {
    %c0_i32 = arith.constant 0 : i32
    %c0_i32_0 = arith.constant 0 : i32
    %c0_i32_1 = arith.constant 0 : i32
    return %c0_i32, %c0_i32_0 : i32, i32
  }
  func.func @transform_3(%arg0: i32) -> (i32, i32) {
    %c0_i32 = arith.constant 0 : i32
    %c0_i32_0 = arith.constant 0 : i32
    return %c0_i32, %arg0 : i32, i32
  }
}

</mosaic_0001>

<bundles_post_ra>
// kernel: tpu_custom_call.1
= control target key start
LH: loop header
LB: loop body
LE: loop exit
PB: predicated region body
PF: predicated region fallthrough
CT: control target
= control target key end

     0   :  { %8 = vsyncpa [#allocation3], 0  ;;  %s1450_s0 = inlined_call_operand.hbm [shape: s32[2,256], index: 0, kind: input, shape index: {}]   ;;  %s1451_s1 = inlined_call_operand.hbm [shape: f32[24,128], index: 1, kind: input, shape index: {}]   ;;  %s1452_s2 = inlined_call_operand.hbm [shape: f32[24,128], index: 2, kind: input, shape index: {}]   ;;  %s1453_s3 = inlined_call_operand.hbm [shape: f32[1,256], index: 3, kind: output, shape index: {}]  }
   0x1   :  { %10 = vsyncpa [#allocation3 + $0x1], 0 }
   0x2   :  { %11 = vsyncpa [#allocation6], 0 }
   0x3   :  { %12 = vsyncpa [#allocation4], 0 }
   0x4   :  { %14 = vsyncpa [#allocation4 + $0x1], 0  ;;  %s1119_s12 = smov 0   ;;  %s1121_s13 = smov 0  }
   0x5   :  { %s1123_s14 = smov 0   ;;  %s1125_s15 = smov 0  }
   0x6 LB: > { %s1140_s16 = sadd.s32 4294967295, %s1087_s15   ;;  %s612_s17 = sadd.s32 4294967294, %s1087_s15   ;;  %s1087_s15 = sphi %s1125_s15, %s1473_s15   ;;  %s1083_s14 = sphi %s1123_s14, %s1472_s14   ;;  %s1079_s13 = sphi %s1121_s13, %s1471_s13   ;;  %s1075_s12 = sphi %s1119_s12, %s1470_s12  }
   0x7   : > { %p40_p0 = scmp.ne.s32.totalorder %s1079_s13, %s1075_s12  ;;  %p1454_p1 = scmp.eq.s32.totalorder %s1140_s16, 0 }
   0x8   : > { %p112_p3 = scmp.eq.s32.totalorder %s612_s17, 1  ;;  %p613_p5 = scmp.ge.s32.totalorder %s1087_s15, 1 }
   0x9   : > { %p1149_p4 = por %p1454_p1, %p40_p0  ;;  %p119_p7 = scmp.lt.s32.totalorder %s1087_s15, 3 }
   0xa   : > { %p1154_p6 = por %p112_p3, %p40_p0  ;;  %s1089_s21 = smov [#allocation5]  }
   0xb   : > { %s1457_s18 = scalar_select %p1149_p4, 1, 0 }
   0xc   : > { %s1458_s19 = scalar_select %p1154_p6, 1, 0 }
   0xd   : > { %p1159_p8 = pnand %p613_p5, %p119_p7  ;;  %s131_s22 = sshll.u32 %s1089_s21, 4  ;;  %s1163_s22 = int_to_ptr.vmem [resolvable:$true] %s131_s22 }
   0xe   : > { %s1090_s24 = smov [#allocation7]   ;;  %s931_s28 = scalar_lea.hbm %s1451_s1, 384 }
   0xf   : > { %p870_p9 = pneg %p1159_p8  ;;  %s144_s25 = sshll.u32 %s1090_s24, 4  ;;  %s1174_s25 = int_to_ptr.vmem [resolvable:$true] %s144_s25 }
  0x10   : > { %p932_p12 = scmp.ne.s32.totalorder %s1451_s1, %s931_s28  ;;  %p938_p5 = scmp.lt.u32.totalorder %s931_s28, %s1451_s1 }
  0x11   : > { %p1170_p11 = pnand %p870_p9, %p1454_p1 }
  0x13   : > { %p933_p13 = pneg %p1170_p11 }
  0x15   : > { %p934_p0 = pnand %p933_p13, %p932_p12 }
  0x17   : > { %p935_p3 = pneg %p934_p0 }
  0x19   : > { %p940_p7 = pnand %p938_p5, %p935_p3 }
  0x1b   : > { %943 = shalt.err (!%p940_p7)
}
  0x1c   : > { %s944_s6 = scalar_lea.vmem %s1163_s22, 384  ;;  %p952_p2 = scmp.lt.s32.totalorder %s1163_s22, %s1163_s22 }
  0x1d   : > { %p945_p9 = scmp.ne.s32.totalorder %s1163_s22, %s944_s6  ;;  %p953_p12 = scmp.lt.s32.totalorder %s944_s6, %s944_s6 }
  0x1f   : > { %p947_p10 = pnand %p945_p9, %p933_p13  ;;  %p954_p0 = por %p953_p12, %p952_p2 }
  0x21   : > { %p948_p1 = pneg %p947_p10 }
  0x23   : > { %p955_p6 = pnand %p954_p0, %p948_p1 }
  0x25   : > { %958 = shalt.err (!%p955_p6)
}
  0x26   : > { %s1091_s7 = smov 128   ;;  %s1092_s8 = smov 8  }
  0x27   : > { %873 = dma.hbm_to_vmem [thread:$0]  (!%p1170_p11), %s1451_s1, 384, %s1163_s22, [#allocation6], %s1091_s7, %s1091_s7, %s1092_s8  }
  0x28   : > { %s959_s21 = scalar_lea.hbm %s1452_s2, 384 }
  0x29   : > { %p960_p2 = scmp.ne.s32.totalorder %s1452_s2, %s959_s21  ;;  %p966_p10 = scmp.lt.u32.totalorder %s959_s21, %s1452_s2 }
  0x2b   : > { %p962_p1 = pnand %p960_p2, %p933_p13 }
  0x2d   : > { %p963_p6 = pneg %p962_p1 }
  0x2f   : > { %p968_p3 = pnand %p966_p10, %p963_p6 }
  0x31   : > { %971 = shalt.err (!%p968_p3)
}
  0x32   : > { %s972_s22 = scalar_lea.vmem %s1174_s25, 384  ;;  %p980_p12 = scmp.lt.s32.totalorder %s1174_s25, %s1174_s25 }
  0x33   : > { %p973_p5 = scmp.ne.s32.totalorder %s1174_s25, %s972_s22  ;;  %p981_p0 = scmp.lt.s32.totalorder %s972_s22, %s972_s22 }
  0x35   : > { %p975_p7 = pnand %p973_p5, %p933_p13  ;;  %p982_p2 = por %p981_p0, %p980_p12 }
  0x37   : > { %p976_p9 = pneg %p975_p7 }
  0x39   : > { %p983_p1 = pnand %p982_p2, %p976_p9 }
  0x3b   : > { %986 = shalt.err (!%p983_p1)
}
  0x3c   : > { %876 = dma.hbm_to_vmem [thread:$0]  (!%p1170_p11), %s1452_s2, 384, %s1174_s25, [#allocation6], %s1091_s7, %s1091_s7, %s1092_s8  }
  0x3d   : > { %s1229_s4 = sadd.s32 1, %s1087_s15   ;;  %s27_s23 = sadd.s32 1, %s1083_s14 }
  0x3e   : > { %s24_s5 = ssub.s32 %s1087_s15, %s1229_s4  ;;  %p34_p13 = scmp.ne.s32.totalorder %s1083_s14, %s1079_s13 }
  0x3f   : > { %p25_p6 = scmp.eq.s32.totalorder %s24_s5, 0  ;;  %p35_p10 = scmp.eq.s32.totalorder %s1087_s15, 0 }
  0x40   : > { %p1461_p3 = scmp.eq.s32.totalorder %s1140_s16, 1  ;;  %p887_p7 = scmp.lt.s32.totalorder %s1087_s15, 2 }
  0x41   : > { %s1245_s9 = scalar_select %p25_p6, %s1083_s14, %s27_s23  }
  0x42   : > { %p1239_p5 = por %p1461_p3, %p34_p13  ;;  %p36_p9 = por %p35_p10, %p34_p13 }
  0x43   : > { %s158_s10 = sand.u32 1, %s1083_s14   ;;  %s618_s25 = sshll.u32 %s1087_s15, 5 }
  0x44   : > { %s1462_s6 = scalar_select %p1239_p5, 1, 0 }
  0x45   : > { %s617_s11 = sshll.u32 %s158_s10, 1  ;;  %s1252_s17 = scalar_lea.hbm %s1450_s0, %s618_s25 }
  0x46   : > { %s162_s21 = scalar_lea.vmem [#allocation2], %s617_s11  ;;  %p1256_p11 = pnand %p887_p7, %p36_p9 }
  0x47   : > { %s169_s24 = sshll.u32 %s162_s21, 4  ;;  %s159_s27 = scalar_lea.sflag [#allocation3], %s158_s10  ;;  %s1254_s24 = int_to_ptr.vmem [resolvable:$true] %s169_s24 }
  0x48   : > { %s987_s28 = scalar_lea.hbm %s1252_s17, 32  ;;  %p989_p0 = pneg %p1256_p11 }
  0x49   : > { %p988_p12 = scmp.ne.s32.totalorder %s1252_s17, %s987_s28  ;;  %s992_s30 = scalar_lea.hbm %s1450_s0, 64 }
  0x4a   : > { %p993_p13 = scmp.lt.u32.totalorder %s1252_s17, %s1450_s0  ;;  %p994_p6 = scmp.lt.u32.totalorder %s992_s30, %s987_s28 }
  0x4b   : > { %p990_p2 = pnand %p989_p0, %p988_p12  ;;  %p996_p3 = scmp.lt.u32.totalorder %s987_s28, %s1252_s17 }
  0x4c   : > { %p995_p10 = por %p994_p6, %p993_p13 }
  0x4d   : > { %p991_p1 = pneg %p990_p2 }
  0x4e   : > { %p997_p7 = por %p996_p3, %p995_p10 }
  0x50   : > { %p998_p9 = pnand %p997_p7, %p991_p1 }
  0x52   : > { %1001 = shalt.err (!%p998_p9)
}
  0x53   : > { %s1002_s10 = scalar_lea.vmem %s1254_s24, 32  ;;  %s1093_s11 = smov [#allocation2]  }
  0x54   : > { %p1003_p12 = scmp.ne.s32.totalorder %s1254_s24, %s1002_s10  ;;  %s1007_s25 = sshll.u32 %s1093_s11, 4  ;;  %s1008_s25 = int_to_ptr.vmem [resolvable:$false] %s1007_s25 }
  0x55   : > { %s1009_s7 = scalar_lea.vmem %s1008_s25, 64  ;;  %p1010_p4 = scmp.lt.s32.totalorder %s1254_s24, %s1008_s25 }
  0x56   : > { %p1005_p2 = pnand %p1003_p12, %p989_p0  ;;  %p1011_p13 = scmp.lt.s32.totalorder %s1009_s7, %s1002_s10 }
  0x58   : > { %p1006_p5 = pneg %p1005_p2  ;;  %p1012_p6 = por %p1011_p13, %p1010_p4 }
  0x5a   : > { %p1013_p10 = pnand %p1012_p6, %p1006_p5 }
  0x5c   : > { %1016 = shalt.err (!%p1013_p10)
}
  0x5d   : > { %880 = dma.hbm_to_vmem [thread:$0]  (!%p1256_p11), %s1252_s17, 32, %s1254_s24, %s159_s27  }
  0x5e   : > { %178 = sbr.rel (%p1159_p8) target bundleno = 397 (0x18d), region = 32  ;;  %s1288_s8 = sand.u32 (!%p1159_p8), 1, %s1079_s13  }
  0x5f   : > { %s620_s21 = sshll.u32 (!%p1159_p8), %s1288_s8, 1  ;;  %s181_s28 = scalar_lea.sflag (!%p1159_p8), [#allocation3], %s1288_s8 }
  0x60   : > { %s184_s22 = scalar_lea.vmem (!%p1159_p8), [#allocation2], %s620_s21  ;;  %p1464_p4 = scmp.ne.s32.totalorder (!%p1159_p8), %s1457_s18, 0 }
  0x65   : > { %1062 = dma.done.wait (%p1464_p4), %s181_s28, 32  }
  0x66   : > { %1064 = vsyncadd (%p1464_p4), %s181_s28, 4294967264  ;;  %p1465_p5 = scmp.eq.s32.totalorder %s1140_s16, 0 }
  0x68   : > { %1066 = dma.done.wait (%p1465_p5), [#allocation6], 768   ;;  %p1466_p11 = pmov %p1465_p5 }
  0x69   : > { %v215_v0 = vlaneseq  ;;  %v1094_v1 = vmov 0.0|0.0   ;;  %vm1095_vm0 = vmmov 0   ;;  %v1096_v3 = vmov 0.0   ;;  %v214_v7 = vld [vmem:[%s184_s22] sm:$0x3]  ;;  %v336_v25 = vld [vmem:[#allocation5] sm:$0xff] }
  0x6a   : > { %1068 = vsyncadd (%p1466_p11), [#allocation6], 4294966528  ;;  %810 = vmatprep.subr.bf16.mxu0 %v1094_v1  ;;  %834 = vmatprep.subr.bf16.mxu1 %v1094_v1  ;;  %v1097_v14 = vmov 1.0|1.0   ;;  %v419_v26 = vld [vmem:[#allocation7] sm:$0xff]  ;;  %v337_v27 = vld [vmem:[#allocation5 + $0x8] sm:$0xff] }
  0x6b   : > { %v1302_v2 = vshrl.u32 %v215_v0, 7  ;;  %760 = vmatprep.mubr.msk.f32.mxu0 %vm1095_vm0, %v1096_v3  ;;  %801 = vmatprep.mubr.msk.f32.mxu1 %vm1095_vm0, %v1096_v3  ;;  %v420_v28 = vld [vmem:[#allocation7 + $0x8] sm:$0xff]  ;;  %v338_v29 = vld [vmem:[#allocation5 + $0x10] sm:$0xff]  ;;  %v421_v30 = vld [vmem:[#allocation7 + $0x10] sm:$0xff]  ;;  %s687_s18 = sshll.u32 %s1140_s16, 4  ;;  %s213_s20 = scalar_lea.vmem [#allocation8], %s1288_s8 }
  0x6c   : > { %s527_s17 = sshll.u32 %s213_s20, 4  ;;  %s1406_s27 = scalar_lea.hbm %s1453_s3, %s687_s18  ;;  %s1408_s17 = int_to_ptr.vmem [resolvable:$true] %s527_s17 }
  0x6d   : > { %v234_v4 = vsub.s32 0, %v1302_v2  ;;  %v286_v5 = vsub.s32 1, %v1302_v2  ;;  %v217_v6 = vadd.s32 8, %v1302_v2  ;;  %v218_v8 = vadd.s32 16, %v1302_v2  ;;  %s515_s29 = scalar_lea.sflag [#allocation4], %s1288_s8  ;;  %s1017_s30 = scalar_lea.vmem %s1408_s17, 16 }
  0x6e   : > { %v219_v9 = vadd.s32 24, %v1302_v2  ;;  %v220_v12 = vadd.s32 32, %v1302_v2  ;;  %v221_v13 = vadd.s32 40, %v1302_v2  ;;  %v222_v15 = vadd.s32 48, %v1302_v2  ;;  %p1018_p8 = scmp.ne.s32.totalorder %s1408_s17, %s1017_s30  ;;  %p1467_p0 = scmp.ne.s32.totalorder %s1462_s6, 0 }
  0x6f   : > { %v1313_v10 = vrot.slane %v214_v7, %v234_v4  ;;  %v1315_v11 = vrot.slane %v214_v7, %v286_v5  ;;  %v223_v16 = vadd.s32 56, %v1302_v2  ;;  %v224_v17 = vadd.s32 64, %v1302_v2  ;;  %s1098_s16 = smov [#allocation8]  }
  0x70   : > { %v225_v18 = vadd.s32 72, %v1302_v2  ;;  %v226_v19 = vadd.s32 80, %v1302_v2  ;;  %v227_v20 = vadd.s32 88, %v1302_v2  ;;  %v228_v21 = vadd.s32 96, %v1302_v2  ;;  %p1019_p1 = pnand %p1018_p8, %p1467_p0  ;;  %s1021_s23 = sshll.u32 %s1098_s16, 4  ;;  %s1022_s23 = int_to_ptr.vmem [resolvable:$false] %s1021_s23 }
  0x71   : > { %vm236_vm1 = vcmp.eq.s32.totalorder %v1302_v2, %v1313_v10  ;;  %vm237_vm2 = vcmp.eq.s32.totalorder %v217_v6, %v1313_v10  ;;  %vm288_vm3 = vcmp.eq.s32.totalorder %v1302_v2, %v1315_v11  ;;  %vm289_vm4 = vcmp.eq.s32.totalorder %v217_v6, %v1315_v11  ;;  %s1023_s5 = scalar_lea.vmem %s1022_s23, 32  ;;  %p1024_p7 = scmp.lt.s32.totalorder %s1408_s17, %s1022_s23 }
  0x72   : > { %vm811_vm5 = vmpackc.low %vm237_vm2, %vm236_vm1  ;;  %vm238_vm6 = vcmp.eq.s32.totalorder %v218_v8, %v1313_v10  ;;  %vm239_vm7 = vcmp.eq.s32.totalorder %v219_v9, %v1313_v10  ;;  %vm290_vm8 = vcmp.eq.s32.totalorder %v218_v8, %v1315_v11  ;;  %vm291_vm9 = vcmp.eq.s32.totalorder %v219_v9, %v1315_v11  ;;  %p1020_p3 = pneg %p1019_p1  ;;  %p1025_p9 = scmp.lt.s32.totalorder %s1023_s5, %s1017_s30 }
  0x73   : > { %812 = vmatpush3.bf16.msk.msra.mxu0 %vm811_vm5, %v1097_v14  ;;  %vm835_vm10 = vmpackc.low %vm289_vm4, %vm288_vm3  ;;  %vm240_vm13 = vcmp.eq.s32.totalorder %v220_v12, %v1313_v10  ;;  %vm241_vm14 = vcmp.eq.s32.totalorder %v221_v13, %v1313_v10  ;;  %vm292_vm15 = vcmp.eq.s32.totalorder %v220_v12, %v1315_v11  ;;  %vm293_vm1 = vcmp.eq.s32.totalorder %v221_v13, %v1315_v11 }
  0x74   : > { %836 = vmatpush3.bf16.msk.msra.mxu1 %vm835_vm10, %v1097_v14  ;;  %813 = vmatprep.subr.bf16.mxu0 %v1094_v1  ;;  %vm814_vm11 = vmpackc.low %vm239_vm7, %vm238_vm6  ;;  %vm242_vm4 = vcmp.eq.s32.totalorder %v222_v15, %v1313_v10  ;;  %vm243_vm5 = vcmp.eq.s32.totalorder %v223_v16, %v1313_v10  ;;  %vm294_vm6 = vcmp.eq.s32.totalorder %v222_v15, %v1315_v11  ;;  %v229_v22 = vadd.s32 104, %v1302_v2  ;;  %p1026_p12 = por %p1025_p9, %p1024_p7 }
  0x75   : > { %837 = vmatprep.subr.bf16.mxu1 %v1094_v1  ;;  %vm838_vm12 = vmpackc.low %vm291_vm9, %vm290_vm8  ;;  %vm295_vm7 = vcmp.eq.s32.totalorder %v223_v16, %v1315_v11  ;;  %vm244_vm10 = vcmp.eq.s32.totalorder %v224_v17, %v1313_v10  ;;  %v230_v23 = vadd.s32 112, %v1302_v2  ;;  %v231_v24 = vadd.s32 120, %v1302_v2 }
  0x76   : > { %vm817_vm2 = vmpackc.low %vm241_vm14, %vm240_vm13  ;;  %vm297_vm13 = vcmp.eq.s32.totalorder %v225_v18, %v1315_v11  ;;  %p1027_p2 = pnand %p1026_p12, %p1020_p3 }
  0x77   : > { %815 = vmatpush3.bf16.msk.msra.mxu0 %vm814_vm11, %v1097_v14  ;;  %vm841_vm3 = vmpackc.low %vm293_vm1, %vm292_vm15  ;;  %vm245_vm11 = vcmp.eq.s32.totalorder %v225_v18, %v1313_v10  ;;  %vm246_vm1 = vcmp.eq.s32.totalorder %v226_v19, %v1313_v10 }
  0x78   : > { %839 = vmatpush3.bf16.msk.msra.mxu1 %vm838_vm12, %v1097_v14  ;;  %816 = vmatprep.subr.bf16.mxu0 %v1094_v1  ;;  %vm820_vm8 = vmpackc.low %vm243_vm5, %vm242_vm4  ;;  %vm296_vm12 = vcmp.eq.s32.totalorder %v224_v17, %v1315_v11  ;;  %vm299_vm4 = vcmp.eq.s32.totalorder %v227_v20, %v1315_v11 }
  0x79   : > { %840 = vmatprep.subr.bf16.mxu1 %v1094_v1  ;;  %vm844_vm9 = vmpackc.low %vm295_vm7, %vm294_vm6  ;;  %vm248_vm7 = vcmp.eq.s32.totalorder %v228_v21, %v1313_v10 }
  0x7a   : > { %vm823_vm14 = vmpackc.low %vm245_vm11, %vm244_vm10  ;;  %vm301_vm10 = vcmp.eq.s32.totalorder %v229_v22, %v1315_v11 }
  0x7b   : > { %818 = vmatpush3.bf16.msk.msra.mxu0 %vm817_vm2, %v1097_v14  ;;  %vm847_vm15 = vmpackc.low %vm297_vm13, %vm296_vm12  ;;  %vm247_vm2 = vcmp.eq.s32.totalorder %v227_v20, %v1313_v10  ;;  %vm250_vm13 = vcmp.eq.s32.totalorder %v230_v23, %v1313_v10 }
  0x7c   : > { %842 = vmatpush3.bf16.msk.msra.mxu1 %vm841_vm3, %v1097_v14  ;;  %819 = vmatprep.subr.bf16.mxu0 %v1094_v1  ;;  %vm298_vm3 = vcmp.eq.s32.totalorder %v226_v19, %v1315_v11  ;;  %vm826_vm5 = vmpackc.low %vm247_vm2, %vm246_vm1  ;;  %vm303_vm1 = vcmp.eq.s32.totalorder %v231_v24, %v1315_v11 }
  0x7d   : > { %843 = vmatprep.subr.bf16.mxu1 %v1094_v1  ;;  %vm850_vm6 = vmpackc.low %vm299_vm4, %vm298_vm3 }
  0x7f   : > { %821 = vmatpush3.bf16.msk.msra.mxu0 %vm820_vm8, %v1097_v14  ;;  %vm249_vm8 = vcmp.eq.s32.totalorder %v229_v22, %v1313_v10 }
  0x80   : > { %845 = vmatpush3.bf16.msk.msra.mxu1 %vm844_vm9, %v1097_v14  ;;  %822 = vmatprep.subr.bf16.mxu0 %v1094_v1  ;;  %vm300_vm9 = vcmp.eq.s32.totalorder %v228_v21, %v1315_v11  ;;  %vm829_vm11 = vmpackc.low %vm249_vm8, %vm248_vm7 }
  0x81   : > { %846 = vmatprep.subr.bf16.mxu1 %v1094_v1  ;;  %vm853_vm12 = vmpackc.low %vm301_vm10, %vm300_vm9 }
  0x83   : > { %824 = vmatpush3.bf16.msk.msra.mxu0 %vm823_vm14, %v1097_v14  ;;  %vm251_vm14 = vcmp.eq.s32.totalorder %v231_v24, %v1313_v10 }
  0x84   : > { %848 = vmatpush3.bf16.msk.msra.mxu1 %vm847_vm15, %v1097_v14  ;;  %825 = vmatprep.subr.bf16.mxu0 %v1094_v1  ;;  %vm302_vm15 = vcmp.eq.s32.totalorder %v230_v23, %v1315_v11  ;;  %vm832_vm2 = vmpackc.low %vm251_vm14, %vm250_vm13 }
  0x85   : > { %849 = vmatprep.subr.bf16.mxu1 %v1094_v1  ;;  %vm856_vm3 = vmpackc.low %vm303_vm1, %vm302_vm15 }
  0x87   : > { %827 = vmatpush3.bf16.msk.msra.mxu0 %vm826_vm5, %v1097_v14 }
  0x88   : > { %851 = vmatpush3.bf16.msk.msra.mxu1 %vm850_vm6, %v1097_v14  ;;  %828 = vmatprep.subr.bf16.mxu0 %v1094_v1 }
  0x89   : > { %852 = vmatprep.subr.bf16.mxu1 %v1094_v1 }
  0x8b   : > { %830 = vmatpush3.bf16.msk.msra.mxu0 %vm829_vm11, %v1097_v14 }
  0x8c   : > { %854 = vmatpush3.bf16.msk.msra.mxu1 %vm853_vm12, %v1097_v14  ;;  %831 = vmatprep.subr.bf16.mxu0 %v1094_v1 }
  0x8d   : > { %855 = vmatprep.subr.bf16.mxu1 %v1094_v1 }
  0x8f   : > { %833 = vmatpush3.bf16.msk.msra.mxu0 %vm832_vm2, %v1097_v14 }
  0x90   : > { %857 = vmatpush3.bf16.msk.msra.mxu1 %vm856_vm3, %v1097_v14 }
  0x92   : > { %761 = vmatmul.mubr.f32.vlgmr.msra.gmra.mrb[0].mxu0 %v336_v25 }
  0x93   : > { %802 = vmatmul.mubr.f32.vlgmr.msra.gmra.mrb[0].mxu1 %v419_v26  ;;  %763 = vmatprep.mubr.msk.f32.mxu0 %vm1095_vm0, %v1096_v3 }
  0x94   : > { %804 = vmatprep.mubr.msk.f32.mxu1 %vm1095_vm0, %v1096_v3 }
  0x96   : > { %764 = vmatmul.mubr.f32.gmra.mrb[2].mxu0 %v337_v27 }
  0x97   : > { %805 = vmatmul.mubr.f32.gmra.mrb[2].mxu1 %v420_v28  ;;  %766 = vmatprep.mubr.msk.f32.mxu0 %vm1095_vm0, %v1096_v3 }
  0x98   : > { %807 = vmatprep.mubr.msk.f32.mxu1 %vm1095_vm0, %v1096_v3 }
  0x9a   : > { %767 = vmatmul.mubr.f32.gmra.mrb[4].mxu0 %v338_v29 }
  0x9b   : > { %808 = vmatmul.mubr.f32.gmra.mrb[4].mxu1 %v421_v30 }
 0x165   : > { %v405_v31 = vpop.f32.mrb[0].mxu0 }
 0x166   : > { %v488_v32 = vpop.f32.mrb[0].mxu1  ;;  %v762_v33 = vpop.f32.mrb[1].mxu0 }
 0x167   : > { %v502_v34 = vmul.f32 %v488_v32, %v405_v31  ;;  %v803_v35 = vpop.f32.mrb[1].mxu1 }
 0x169   : > { %v410_v36 = vpop.f32.mrb[2].mxu0 }
 0x16a   : > { %v493_v37 = vpop.f32.mrb[2].mxu1  ;;  %v765_v38 = vpop.f32.mrb[3].mxu0 }
 0x16b   : > { %v503_v39 = vmul.f32 %v493_v37, %v410_v36  ;;  %v806_v40 = vpop.f32.mrb[3].mxu1 }
 0x16d   : > { %v505_v41 = vadd.f32 %v503_v39, %v502_v34  ;;  %v415_v42 = vpop.f32.mrb[4].mxu0 }
 0x16e   : > { %v498_v43 = vpop.f32.mrb[4].mxu1  ;;  %v768_v44 = vpop.f32.mrb[5].mxu0 }
 0x16f   : > { %v504_v45 = vmul.f32 %v498_v43, %v415_v42  ;;  %v809_v46 = vpop.f32.mrb[5].mxu1 }
 0x171   : > { %v506_v47 = vadd.f32 %v505_v41, %v504_v45 }
 0x173   : > { %v507_v48 = vrot.slane %v506_v47, 4 }
 0x175   : > { %v508_v49 = vadd.f32 %v507_v48, %v506_v47 }
 0x177   : > { %v509_v50 = vrot.slane %v508_v49, 2 }
 0x179   : > { %v510_v51 = vadd.f32 %v509_v50, %v508_v49 }
 0x17b   : > { %v511_v52 = vrot.slane %v510_v51, 1 }
 0x17d   : > { %v512_v53 = vadd.f32 %v511_v52, %v510_v51 }
 0x17f   : > { %513 = vst [vmem:[%s213_s20] sm:$0x1] %v512_v53 }
 0x180   : > { %1030 = shalt.err (!%p1027_p2)
}
 0x181   : > { %s1031_s10 = scalar_lea.hbm %s1406_s27, 16  ;;  %s1035_s7 = scalar_lea.hbm %s1453_s3, 32 }
 0x182   : > { %p1032_p13 = scmp.ne.s32.totalorder %s1406_s27, %s1031_s10  ;;  %p1036_p4 = scmp.lt.u32.totalorder %s1406_s27, %s1453_s3 }
 0x183   : > { %p1037_p5 = scmp.lt.u32.totalorder %s1035_s7, %s1031_s10  ;;  %p1039_p8 = scmp.lt.u32.totalorder %s1031_s10, %s1406_s27 }
 0x184   : > { %p1033_p6 = pnand %p1032_p13, %p1467_p0 }
 0x185   : > { %p1038_p11 = por %p1037_p5, %p1036_p4 }
 0x186   : > { %p1034_p10 = pneg %p1033_p6 }
 0x187   : > { %p1040_p1 = por %p1039_p8, %p1038_p11 }
 0x189   : > { %p1041_p3 = pnand %p1040_p1, %p1034_p10 }
 0x18b   : > { %1044 = shalt.err (!%p1041_p3)
}
 0x18c   : > { %868 = dma.vmem_to_hbm [thread:$0]  (%p1467_p0), %s1408_s17, 16, %s1406_s27, %s515_s29  }
 0x18d PF: > { %s539_s28 = sand.u32 1, %s1075_s12   ;;  %p1468_p7 = scmp.ne.s32.totalorder %s1458_s19, 0 }
 0x18e   : > { %p1469_p9 = scmp.ge.s32.totalorder %s1087_s15, 2  ;;  %s540_s22 = scalar_lea.sflag [#allocation4], %s539_s28 }
 0x190   : > { %p882_p12 = pnand %p1469_p9, %p1468_p7 }
 0x192   : > { %1070 = dma.done.wait (!%p882_p12), %s540_s22, 16  }
 0x193   : > { %1072 = vsyncadd (!%p882_p12), %s540_s22, 4294967280  ;;  %p17_p2 = scmp.ge.s32.totalorder %s1229_s4, 4   ;;  %s1470_s12 = smov %s1079_s13 }
 0x194   : > { %s1471_s13 = smov %s1083_s14  ;;  %s1472_s14 = smov %s1245_s9 }
 0x195   : > { %s1473_s15 = smov %s1229_s4  ;;  %19 = sbr.rel (!%p17_p2) target bundleno = 6 (0x6), region = 85 }
 0x19c   :  { %544 = vsyncpa [#allocation3], 1 }
 0x19d   :  { %546 = vsyncpa [#allocation3 + $0x1], 1 }
 0x19e   :  { %547 = vsyncpa [#allocation6], 1 }
 0x19f   :  { %548 = vsyncpa [#allocation4], 1 }
 0x1a0   :  { %550 = vsyncpa [#allocation4 + $0x1], 1 }

</bundles_post_ra>
